<compile_context>
chip_gen: v7x
topology: tpu7x:2x2x1
jax: 0.10.0
libtpu: 0.0.40
codegen_flags: <defaults>
</compile_context>

<pallas_src>
import functools

import jax
import jax.numpy as jnp
from jax.experimental import pallas as pl
from jax.experimental.pallas import tpu as pltpu


def _mhsa_kernel(x_ref, w_ref, o_ref, *, head_dim):
    # x_ref: (Z, S, D)    Z = B*H; row z = (b, h); x replicated across heads.
    # w_ref: (Z, D, 3*D)  kind-major fused [Wq | Wk | Wv] for that (b, h).
    # o_ref: (Z, S, D)    per-(b, h) attention output.
    D = head_dim

    x = x_ref[...]                                            # (Z, S, D)
    w = w_ref[...]                                            # (Z, D, 3D)

    # All heads & batches in one batched MXU matmul (single batch dim z).
    qkv = jnp.einsum("zsd,zdf->zsf", x, w,
                     preferred_element_type=jnp.float32)      # (Z, S, 3D)

    # Kind-major columns -> three contiguous static lane slices.
    q = qkv[:, :, 0 * D:1 * D]                                # (Z, S, D)
    k = qkv[:, :, 1 * D:2 * D]                                # (Z, S, D)
    v = qkv[:, :, 2 * D:3 * D]                                # (Z, S, D)

    # Scores; scale AFTER the dot so the rounding matches the reference's
    # Q K^T / sqrt(D) order under XLA's default matmul precision.
    s = jnp.einsum("zqd,zkd->zqk", q, k,
                   preferred_element_type=jnp.float32)        # (Z, S, S)
    s = s * (1.0 / (D ** 0.5))

    # Numerically stable softmax with exact division (no approx reciprocal).
    m = jnp.max(s, axis=-1, keepdims=True)
    e = jnp.exp(s - m)
    p = e / jnp.sum(e, axis=-1, keepdims=True)

    z = jnp.einsum("zqk,zkd->zqd", p, v,
                   preferred_element_type=jnp.float32)        # (Z, S, D)

    # Direct store: no in-kernel reshape / transpose / concat.
    o_ref[...] = z.astype(o_ref.dtype)


@jax.jit
def multi_head_self_attention(x, wq, wk, wv):
    """x: (B, S, D_head); wq/wk/wv: (H, D_head, D_head) -> (B, H*S, D_head)."""
    B, S, D = x.shape
    H = wq.shape[0]
    assert wq.shape == (H, D, D) and wk.shape == (H, D, D) and wv.shape == (H, D, D)
    Z = B * H

    # Flatten (batch, head) into one batch axis z = b*H + h:
    #   - x replicated over heads,
    #   - kind-major fused per-head weights [Wq | Wk | Wv] tiled over batch.
    # All tensors are a few KiB, so the replication is negligible and lets the
    # kernel use only single-batch-dim einsums (no in-kernel relayouts).
    xz = jnp.broadcast_to(x[:, None], (B, H, S, D)).reshape(Z, S, D)
    w_fused = jnp.concatenate([wq, wk, wv], axis=-1)            # (H, D, 3D)
    wz = jnp.broadcast_to(w_fused[None], (B, H, D, 3 * D)).reshape(Z, D, 3 * D)

    out = pl.pallas_call(
        functools.partial(_mhsa_kernel, head_dim=D),
        out_shape=jax.ShapeDtypeStruct((Z, S, D), x.dtype),
        grid=(1,),
        in_specs=[
            pl.BlockSpec((Z, S, D), lambda i: (0, 0, 0)),       # xz (full, VMEM)
            pl.BlockSpec((Z, D, 3 * D), lambda i: (0, 0, 0)),   # fused weights
        ],
        out_specs=pl.BlockSpec((Z, S, D), lambda i: (0, 0, 0)),
        compiler_params=pltpu.CompilerParams(
            dimension_semantics=("arbitrary",)),
    )(xz, wz)

    # torch.cat over heads along the sequence axis == free reshape of the
    # (b, h) batch axis; no transpose needed.
    return out.reshape(B, H * S, D)


def _reference(x, wq, wk, wv):
    """Pure-JAX reference mirroring the PyTorch forward (intended softmax)."""
    B, S, D = x.shape
    zs = []
    for h in range(wq.shape[0]):
        q = x @ wq[h]
        k = x @ wk[h]
        v = x @ wv[h]
        s = jnp.einsum("bqd,bkd->bqk", q, k) / (D ** 0.5)
        p = jax.nn.softmax(s, axis=-1)
        zs.append(jnp.einsum("bqk,bkd->bqd", p, v))
    return jnp.concatenate(zs, axis=1)


if __name__ == "__main__":
    nheads = 4
    embed_dim = 32
    head_dim = embed_dim // nheads          # = 8; x feature dim must equal this
    B, S = 2, 8

    key = jax.random.PRNGKey(0)
    kx, kq, kk, kv = jax.random.split(key, 4)

    # Moderate input scale keeps the softmax logits O(1), so the comparison is not
    # dominated by exp-amplified differences between the kernel's f32 MXU math and
    # the reference's default-precision (bf16-operand) XLA dots.
    x = 0.25 * jax.random.normal(kx, (B, S, head_dim), dtype=jnp.float32)
    # nn.init.norm_ (typo for normal_) -> standard normal, deterministic here.
    wq = jax.random.normal(kq, (nheads, head_dim, head_dim), dtype=jnp.float32)
    wk = jax.random.normal(kk, (nheads, head_dim, head_dim), dtype=jnp.float32)
    wv = jax.random.normal(kv, (nheads, head_dim, head_dim), dtype=jnp.float32)

    out = multi_head_self_attention(x, wq, wk, wv)
    out = jax.block_until_ready(out)

    ref = _reference(x, wq, wk, wv)
    assert out.shape == (B, nheads * S, head_dim), out.shape
    # Tolerance covers the matmul-precision gap between the in-kernel f32 dots and
    # the reference evaluated at XLA's default TPU matmul precision.
    max_err = float(jnp.max(jnp.abs(out - ref)))
    assert jnp.allclose(out, ref, atol=5e-2, rtol=5e-2), f"mismatch, max_err={max_err}"

    print("KERNEL_OK")
</pallas_src>

<mosaic_0001>
module attributes {stable_mosaic.version = 11 : i64} {
  func.func @_mhsa_kernel(%arg0: i32, %arg1: memref<8x8x8xf32, #tpu.memory_space<vmem>>, %arg2: memref<8x8x24xf32, #tpu.memory_space<vmem>>, %arg3: memref<8x8x8xf32, #tpu.memory_space<vmem>>) attributes {dimension_semantics = [#tpu.dimension_semantics<arbitrary>], iteration_bounds = array<i64: 1>, scalar_prefetch = 0 : i64, scratch_operands = 0 : i64, tpu.core_type = #tpu.core_type<tc>, window_params = [{pipeline_mode = #tpu.pipeline_mode<synchronous>, transform_indices = @transform_0, window_bounds = array<i64: 8, 8, 8>}, {pipeline_mode = #tpu.pipeline_mode<synchronous>, transform_indices = @transform_1, window_bounds = array<i64: 8, 8, 24>}, {pipeline_mode = #tpu.pipeline_mode<synchronous>, transform_indices = @transform_2, window_bounds = array<i64: 8, 8, 8>}]} {
    %c0 = arith.constant 0 : index
    %c0_0 = arith.constant 0 : index
    %c0_1 = arith.constant 0 : index
    %0 = vector.load %arg1[%c0, %c0_0, %c0_1] : memref<8x8x8xf32, #tpu.memory_space<vmem>>, vector<8x8x8xf32>
    %c0_2 = arith.constant 0 : index
    %c0_3 = arith.constant 0 : index
    %c0_4 = arith.constant 0 : index
    %1 = vector.load %arg2[%c0_2, %c0_3, %c0_4] : memref<8x8x24xf32, #tpu.memory_space<vmem>>, vector<8x8x24xf32>
    "tpu.trace_start"() <{level = 10 : i32, message = "zsd,zdf->zsf"}> : () -> ()
    %cst = arith.constant dense<0.000000e+00> : vector<8x8x24xf32>
    %2 = tpu.matmul %0, %1, %cst {dimension_numbers = #tpu.dot_dimension_numbers<[2], [1], [1], [2], [0, 0, 0, 1, 1, 2], [0], [0]>} : vector<8x8x8xf32>, vector<8x8x24xf32>, vector<8x8x24xf32> -> vector<8x8x24xf32>
    "tpu.trace_stop"() : () -> ()
    %3 = vector.extract_strided_slice %2 {offsets = [0, 0, 0], sizes = [8, 8, 8], strides = [1, 1, 1]} : vector<8x8x24xf32> to vector<8x8x8xf32>
    %4 = vector.extract_strided_slice %2 {offsets = [0, 0, 8], sizes = [8, 8, 8], strides = [1, 1, 1]} : vector<8x8x24xf32> to vector<8x8x8xf32>
    %5 = vector.extract_strided_slice %2 {offsets = [0, 0, 16], sizes = [8, 8, 8], strides = [1, 1, 1]} : vector<8x8x24xf32> to vector<8x8x8xf32>
    "tpu.trace_start"() <{level = 10 : i32, message = "zqd,zkd->zqk"}> : () -> ()
    %cst_5 = arith.constant dense<0.000000e+00> : vector<8x8x8xf32>
    %6 = tpu.matmul %3, %4, %cst_5 {dimension_numbers = #tpu.dot_dimension_numbers<[2], [2], [1], [1], [0, 0, 0, 1, 1, 1], [0], [0]>} : vector<8x8x8xf32>, vector<8x8x8xf32>, vector<8x8x8xf32> -> vector<8x8x8xf32>
    "tpu.trace_stop"() : () -> ()
    %cst_6 = arith.constant 0.353553385 : f32
    %7 = vector.broadcast %cst_6 : f32 to vector<8x8x8xf32>
    %8 = arith.mulf %6, %7 : vector<8x8x8xf32>
    %cst_7 = arith.constant dense<0xFF800000> : vector<8x8xf32>
    %9 = vector.multi_reduction <maximumf>, %8, %cst_7 [2] : vector<8x8x8xf32> to vector<8x8xf32>
    %10 = vector.shape_cast %9 : vector<8x8xf32> to vector<8x8x1xf32>
    %11 = vector.broadcast %10 : vector<8x8x1xf32> to vector<8x8x8xf32>
    %12 = arith.subf %8, %11 : vector<8x8x8xf32>
    %13 = math.exp %12 : vector<8x8x8xf32>
    %cst_8 = arith.constant dense<0.000000e+00> : vector<8x8xf32>
    %14 = vector.multi_reduction <add>, %13, %cst_8 [2] : vector<8x8x8xf32> to vector<8x8xf32>
    %15 = vector.shape_cast %14 : vector<8x8xf32> to vector<8x8x1xf32>
    %16 = vector.broadcast %15 : vector<8x8x1xf32> to vector<8x8x8xf32>
    %17 = arith.divf %13, %16 : vector<8x8x8xf32>
    "tpu.trace_start"() <{level = 10 : i32, message = "zqk,zkd->zqd"}> : () -> ()
    %cst_9 = arith.constant dense<0.000000e+00> : vector<8x8x8xf32>
    %18 = tpu.matmul %17, %5, %cst_9 {dimension_numbers = #tpu.dot_dimension_numbers<[2], [1], [1], [2], [0, 0, 0, 1, 1, 2], [0], [0]>} : vector<8x8x8xf32>, vector<8x8x8xf32>, vector<8x8x8xf32> -> vector<8x8x8xf32>
    "tpu.trace_stop"() : () -> ()
    %c0_10 = arith.constant 0 : index
    %c0_11 = arith.constant 0 : index
    %c0_12 = arith.constant 0 : index
    %19 = vector.load %arg3[%c0_10, %c0_11, %c0_12] : memref<8x8x8xf32, #tpu.memory_space<vmem>>, vector<8x8x8xf32>
    tpu.vector_store %arg3[%c0_10, %c0_11, %c0_12], %18 {strides = array<i32>} : memref<8x8x8xf32, #tpu.memory_space<vmem>>, vector<8x8x8xf32>,
    return
  }
  func.func @transform_0(%arg0: i32) -> (i32, i32, i32) {
    %c0_i32 = arith.constant 0 : i32
    %c0_i32_0 = arith.constant 0 : i32
    %c0_i32_1 = arith.constant 0 : i32
    %c0_i32_2 = arith.constant 0 : i32
    return %c0_i32, %c0_i32_0, %c0_i32_1 : i32, i32, i32
  }
  func.func @transform_1(%arg0: i32) -> (i32, i32, i32) {
    %c0_i32 = arith.constant 0 : i32
    %c0_i32_0 = arith.constant 0 : i32
    %c0_i32_1 = arith.constant 0 : i32
    %c0_i32_2 = arith.constant 0 : i32
    return %c0_i32, %c0_i32_0, %c0_i32_1 : i32, i32, i32
  }
  func.func @transform_2(%arg0: i32) -> (i32, i32, i32) {
    %c0_i32 = arith.constant 0 : i32
    %c0_i32_0 = arith.constant 0 : i32
    %c0_i32_1 = arith.constant 0 : i32
    %c0_i32_2 = arith.constant 0 : i32
    return %c0_i32, %c0_i32_0, %c0_i32_1 : i32, i32, i32
  }
}

</mosaic_0001>

<bundles_post_ra>
// kernel: multi_head_self_attention.1
= control target key start
LH: loop header
LB: loop body
LE: loop exit
PB: predicated region body
PF: predicated region fallthrough
CT: control target
= control target key end

     0   :  { %vm27_vm0 = vcmask 64512   ;;  %v2180_v0 = vmov 0.0   ;;  %vm2181_vm1 = vmmov 0   ;;  %s2451_s1 = inlined_call_operand.vmem [shape: f32[8,8,24], index: 1, kind: input, shape index: {}]   ;;  %s2452_s0 = inlined_call_operand.vmem [shape: f32[8,8,8], index: 0, kind: input, shape index: {}]   ;;  %s2453_s2 = inlined_call_operand.vmem [shape: f32[8,8,8], index: 2, kind: output, shape index: {}]  }
   0x1   :  { %2024 = vmatprep.subr.mxu0 %v2180_v0  ;;  %v19_v1 = vld [vmem:[%s2451_s1] sm:$0xff]  ;;  %2026 = vmatprep.mubr.msk.f32.mxu0 %vm2181_vm1, %v2180_v0  ;;  %v21_v3 = vld [vmem:[%s2451_s1 + $0x10] sm:$0xff]  ;;  %v20_v4 = vld [vmem:[%s2451_s1 + $0x8] sm:$0xff] }
   0x2   :  { %v11_v2 = vld [vmem:[%s2452_s0] sm:$0xff]  ;;  %2025 = vmatpush3.msra.mxu0 %v19_v1  ;;  %2029 = vmatprep.subr.mxu1 %v2180_v0  ;;  %v12_v5 = vld [vmem:[%s2452_s0 + $0x8] sm:$0xff]  ;;  %v13_v6 = vld [vmem:[%s2452_s0 + $0x10] sm:$0xff] }
   0x3   :  { %2027 = vmatmul.mubr.msk.f32.vlgmr.msra.gmra.mrb[0].mxu0 %vm27_vm0, %v11_v2  ;;  %2034 = vmatprep.subr.mxu0 %v2180_v0  ;;  %v22_v7 = vld [vmem:[%s2451_s1 + $0x18] sm:$0xff]  ;;  %v23_v8 = vld [vmem:[%s2451_s1 + $0x20] sm:$0xff]  ;;  %v24_v11 = vld [vmem:[%s2451_s1 + $0x28] sm:$0xff] }
   0x4   :  { %2035 = vmatpush3.msra.mxu0 %v21_v3  ;;  %2030 = vmatpush3.msra.mxu1 %v20_v4  ;;  %v14_v9 = vld [vmem:[%s2452_s0 + $0x18] sm:$0xff]  ;;  %v15_v10 = vld [vmem:[%s2452_s0 + $0x20] sm:$0xff]  ;;  %v25_v12 = vld [vmem:[%s2451_s1 + $0x30] sm:$0xff] }
   0x5   :  { %2031 = vmatprep.mubr.msk.f32.mxu1 %vm2181_vm1, %v2180_v0  ;;  %2036 = vmatprep.mubr.msk.f32.mxu0 %vm2181_vm1, %v2180_v0  ;;  %v16_v13 = vld [vmem:[%s2452_s0 + $0x28] sm:$0xff]  ;;  %v17_v14 = vld [vmem:[%s2452_s0 + $0x30] sm:$0xff]  ;;  %v26_v15 = vld [vmem:[%s2451_s1 + $0x38] sm:$0xff]  ;;  %s2182_s1 = smov 120  }
   0x6   :  { %2032 = vmatmul.mubr.msk.f32.vlgmr.msra.gmra.mrb[0].mxu1 %vm27_vm0, %v12_v5  ;;  %2039 = vmatprep.subr.mxu1 %v2180_v0  ;;  %v18_v16 = vld [vmem:[%s2452_s0 + $0x38] sm:$0xff]  ;;  %s2183_s0 = smov 112  }
   0x7   :  { %2037 = vmatmul.mubr.msk.f32.vlgmr.msra.gmra.mrb[2].mxu0 %vm27_vm0, %v13_v6  ;;  %2040 = vmatpush3.msra.mxu1 %v22_v7 }
   0x8   :  { %2041 = vmatprep.mubr.msk.f32.mxu1 %vm2181_vm1, %v2180_v0  ;;  %2044 = vmatprep.subr.mxu0 %v2180_v0 }
   0x9   :  { %2045 = vmatpush3.msra.mxu0 %v23_v8  ;;  %2046 = vmatprep.mubr.msk.f32.mxu0 %vm2181_vm1, %v2180_v0 }
   0xa   :  { %2042 = vmatmul.mubr.msk.f32.vlgmr.msra.gmra.mrb[2].mxu1 %vm27_vm0, %v14_v9  ;;  %2049 = vmatprep.subr.mxu1 %v2180_v0 }
   0xb   :  { %2047 = vmatmul.mubr.msk.f32.vlgmr.msra.gmra.mrb[4].mxu0 %vm27_vm0, %v15_v10  ;;  %2050 = vmatpush3.msra.mxu1 %v24_v11 }
   0xc   :  { %2051 = vmatprep.mubr.msk.f32.mxu1 %vm2181_vm1, %v2180_v0  ;;  %2054 = vmatprep.subr.mxu0 %v2180_v0 }
   0xd   :  { %2055 = vmatpush3.msra.mxu0 %v25_v12  ;;  %2056 = vmatprep.mubr.msk.f32.mxu0 %vm2181_vm1, %v2180_v0 }
   0xe   :  { %2052 = vmatmul.mubr.msk.f32.vlgmr.msra.gmra.mrb[4].mxu1 %vm27_vm0, %v16_v13  ;;  %2059 = vmatprep.subr.mxu1 %v2180_v0 }
   0xf   :  { %2057 = vmatmul.mubr.msk.f32.vlgmr.msra.gmra.mrb[6].mxu0 %vm27_vm0, %v17_v14  ;;  %2060 = vmatpush3.msra.mxu1 %v26_v15 }
  0x10   :  { %2061 = vmatprep.mubr.msk.f32.mxu1 %vm2181_vm1, %v2180_v0  ;;  %2064 = vmatprep.subr.mxu0 %v2180_v0 }
  0x11   :  { %2066 = vmatprep.mubr.msk.f32.mxu0 %vm2181_vm1, %v2180_v0  ;;  %2069 = vmatprep.subr.mxu1 %v2180_v0 }
  0x12   :  { %2062 = vmatmul.mubr.msk.f32.vlgmr.msra.gmra.mrb[6].mxu1 %vm27_vm0, %v18_v16 }
  0x13   :  { %2071 = vmatprep.mubr.msk.f32.mxu1 %vm2181_vm1, %v2180_v0 }
  0xd6   :  { %v2285_v17 = vpop.f32.mrb[0].mxu0 }
  0xd7   :  { %613 = vrot.lane.b32.xlu0 %v2285_v17, %s2182_s1  ;;  %v2028_v18 = vpop.f32.mrb[1].mxu0 }
  0xd9   :  { %v2288_v19 = vpop.f32.mrb[0].mxu1 }
  0xda   :  { %v2033_v20 = vpop.f32.mrb[1].mxu1  ;;  %v2290_v21 = vpop.f32.mrb[2].mxu0 }
  0xdb   :  { %690 = vrot.lane.b32.xlu0 %v2288_v19, %s2182_s1  ;;  %767 = vrot.lane.b32.xlu1 %v2290_v21, %s2182_s1  ;;  %v2038_v22 = vpop.f32.mrb[3].mxu0 }
  0xdd   :  { %v2294_v23 = vpop.f32.mrb[2].mxu1 }
  0xde   :  { %v2043_v24 = vpop.f32.mrb[3].mxu1  ;;  %v2296_v25 = vpop.f32.mrb[4].mxu0 }
  0xdf   :  { %844 = vrot.lane.b32.xlu1 %v2294_v23, %s2182_s1  ;;  %921 = vrot.lane.b32.xlu0 %v2296_v25, %s2182_s1  ;;  %v2048_v26 = vpop.f32.mrb[5].mxu0 }
  0xe1   :  { %v2300_v27 = vpop.f32.mrb[4].mxu1 }
  0xe2   :  { %v2053_v28 = vpop.f32.mrb[5].mxu1  ;;  %v2302_v29 = vpop.f32.mrb[6].mxu0 }
  0xe3   :  { %998 = vrot.lane.b32.xlu1 %v2300_v27, %s2182_s1  ;;  %1075 = vrot.lane.b32.xlu0 %v2302_v29, %s2182_s1  ;;  %v2058_v30 = vpop.f32.mrb[7].mxu0 }
  0xe5   :  { %v2306_v31 = vpop.f32.mrb[6].mxu1 }
  0xe6   :  { %v2063_v32 = vpop.f32.mrb[7].mxu1 }
  0xe7   :  { %1152 = vrot.lane.b32.xlu1 %v2306_v31, %s2182_s1 }
 0x149   :  { %v614_v33 = vpop.permute.xlu0 %613 }
 0x14a   :  { %2065 = vmatpush3.xpose.msk.msra.mxu0 %vm27_vm0, %v614_v33 }
 0x14b   :  { %2074 = vmatprep.subr.mxu0 %v2180_v0 }
 0x14d   :  { %2067 = vmatmul.mubr.msk.f32.vlgmr.msra.gmra.mrb[8].mxu0 %vm27_vm0, %v2285_v17  ;;  %v691_v34 = vpop.permute.xlu0 %690  ;;  %v768_v35 = vpop.permute.xlu1 %767 }
 0x14e   :  { %2070 = vmatpush3.xpose.msk.msra.mxu1 %vm27_vm0, %v691_v34  ;;  %2075 = vmatpush3.xpose.msk.msra.mxu0 %vm27_vm0, %v768_v35 }
 0x14f   :  { %2076 = vmatprep.mubr.msk.f32.mxu0 %vm2181_vm1, %v2180_v0  ;;  %2079 = vmatprep.subr.mxu1 %v2180_v0 }
 0x150   :  { %2084 = vmatprep.subr.mxu0 %v2180_v0 }
 0x151   :  { %2072 = vmatmul.mubr.msk.f32.vlgmr.msra.gmra.mrb[8].mxu1 %vm27_vm0, %v2288_v19  ;;  %2077 = vmatmul.mubr.msk.f32.vlgmr.msra.gmra.mrb[10].mxu0 %vm27_vm0, %v2290_v21  ;;  %v845_v36 = vpop.permute.xlu1 %844  ;;  %v922_v37 = vpop.permute.xlu0 %921 }
 0x152   :  { %2080 = vmatpush3.xpose.msk.msra.mxu1 %vm27_vm0, %v845_v36  ;;  %2085 = vmatpush3.xpose.msk.msra.mxu0 %vm27_vm0, %v922_v37 }
 0x153   :  { %2081 = vmatprep.mubr.msk.f32.mxu1 %vm2181_vm1, %v2180_v0  ;;  %2086 = vmatprep.mubr.msk.f32.mxu0 %vm2181_vm1, %v2180_v0 }
 0x154   :  { %2089 = vmatprep.subr.mxu1 %v2180_v0  ;;  %2094 = vmatprep.subr.mxu0 %v2180_v0 }
 0x155   :  { %2082 = vmatmul.mubr.msk.f32.vlgmr.msra.gmra.mrb[10].mxu1 %vm27_vm0, %v2294_v23  ;;  %v999_v38 = vpop.permute.xlu1 %998  ;;  %2087 = vmatmul.mubr.msk.f32.vlgmr.msra.gmra.mrb[12].mxu0 %vm27_vm0, %v2296_v25  ;;  %v1076_v39 = vpop.permute.xlu0 %1075 }
 0x156   :  { %2090 = vmatpush3.xpose.msk.msra.mxu1 %vm27_vm0, %v999_v38  ;;  %2095 = vmatpush3.xpose.msk.msra.mxu0 %vm27_vm0, %v1076_v39 }
 0x157   :  { %2091 = vmatprep.mubr.msk.f32.mxu1 %vm2181_vm1, %v2180_v0  ;;  %2096 = vmatprep.mubr.msk.f32.mxu0 %vm2181_vm1, %v2180_v0 }
 0x158   :  { %2099 = vmatprep.subr.mxu1 %v2180_v0  ;;  %2104 = vmatprep.subr.mxu0 %v2180_v0 }
 0x159   :  { %2092 = vmatmul.mubr.msk.f32.vlgmr.msra.gmra.mrb[12].mxu1 %vm27_vm0, %v2300_v27  ;;  %v1153_v40 = vpop.permute.xlu1 %1152  ;;  %2097 = vmatmul.mubr.msk.f32.vlgmr.msra.gmra.mrb[14].mxu0 %vm27_vm0, %v2302_v29 }
 0x15a   :  { %2100 = vmatpush3.xpose.msk.msra.mxu1 %vm27_vm0, %v1153_v40  ;;  %2101 = vmatprep.mubr.msk.f32.mxu1 %vm2181_vm1, %v2180_v0 }
 0x15b   :  { %2109 = vmatprep.subr.mxu1 %v2180_v0  ;;  %2106 = vmatprep.mubr.msk.f32.mxu0 %vm2181_vm1, %v2180_v0 }
 0x15d   :  { %2102 = vmatmul.mubr.msk.f32.vlgmr.msra.gmra.mrb[14].mxu1 %vm27_vm0, %v2306_v31 }
 0x15e   :  { %2111 = vmatprep.mubr.msk.f32.mxu1 %vm2181_vm1, %v2180_v0 }
 0x220   :  { %v685_v41 = vpop.f32.mrb[8].mxu0 }
 0x221   :  { %v1228_v42 = vmul.f32 0.35355338, %v685_v41  ;;  %v2068_v43 = vpop.f32.mrb[9].mxu0 }
 0x223   :  { %v1236_v44 = vsel %vm27_vm0, %v1228_v42, -inf }
 0x224   :  { %v762_v45 = vpop.f32.mrb[8].mxu1  ;;  %1237 = vmax.xlane.f32.xlu0 %v1236_v44  ;;  %v839_v46 = vpop.f32.mrb[10].mxu0 }
 0x225   :  { %v1229_v47 = vmul.f32 0.35355338, %v762_v45  ;;  %v1230_v48 = vmul.f32 0.35355338, %v839_v46  ;;  %v2073_v49 = vpop.f32.mrb[9].mxu1  ;;  %v2078_v50 = vpop.f32.mrb[11].mxu0 }
 0x227   :  { %v1239_v51 = vsel %vm27_vm0, %v1229_v47, -inf  ;;  %v1242_v52 = vsel %vm27_vm0, %v1230_v48, -inf }
 0x228   :  { %1240 = vmax.xlane.f32.xlu1 %v1239_v51  ;;  %v916_v53 = vpop.f32.mrb[10].mxu1  ;;  %1243 = vmax.xlane.f32.xlu0 %v1242_v52  ;;  %v993_v54 = vpop.f32.mrb[12].mxu0 }
 0x229   :  { %v1231_v55 = vmul.f32 0.35355338, %v916_v53  ;;  %v1232_v56 = vmul.f32 0.35355338, %v993_v54  ;;  %v2083_v57 = vpop.f32.mrb[11].mxu1  ;;  %v2088_v58 = vpop.f32.mrb[13].mxu0 }
 0x22b   :  { %v1245_v59 = vsel %vm27_vm0, %v1231_v55, -inf  ;;  %v1248_v60 = vsel %vm27_vm0, %v1232_v56, -inf }
 0x22c   :  { %v1070_v61 = vpop.f32.mrb[12].mxu1  ;;  %1246 = vmax.xlane.f32.xlu0 %v1245_v59  ;;  %1249 = vmax.xlane.f32.xlu1 %v1248_v60  ;;  %v1147_v62 = vpop.f32.mrb[14].mxu0 }
 0x22d   :  { %v1233_v63 = vmul.f32 0.35355338, %v1070_v61  ;;  %v1234_v1 = vmul.f32 0.35355338, %v1147_v62  ;;  %v2093_v2 = vpop.f32.mrb[13].mxu1  ;;  %v2098_v3 = vpop.f32.mrb[15].mxu0 }
 0x22f   :  { %v1251_v4 = vsel %vm27_vm0, %v1233_v63, -inf  ;;  %v1254_v5 = vsel %vm27_vm0, %v1234_v1, -inf }
 0x230   :  { %v1224_v6 = vpop.f32.mrb[14].mxu1  ;;  %1252 = vmax.xlane.f32.xlu0 %v1251_v4  ;;  %1255 = vmax.xlane.f32.xlu1 %v1254_v5 }
 0x231   :  { %v1235_v7 = vmul.f32 0.35355338, %v1224_v6  ;;  %v2103_v8 = vpop.f32.mrb[15].mxu1 }
 0x233   :  { %v1257_v9 = vsel %vm27_vm0, %v1235_v7, -inf }
 0x234   :  { %1258 = vmax.xlane.f32.xlu0 %v1257_v9 }
 0x241   :  { %1324 = vrot.lane.b32.xlu1 %v2285_v17, %s2183_s0 }
 0x245   :  { %1476 = vrot.lane.b32.xlu1 %v2290_v21, %s2183_s0 }
 0x249   :  { %1552 = vrot.lane.b32.xlu1 %v2294_v23, %s2183_s0 }
 0x24a   :  { %1400 = vrot.lane.b32.xlu0 %v2288_v19, %s2183_s0 }
 0x24d   :  { %1704 = vrot.lane.b32.xlu1 %v2300_v27, %s2183_s0 }
 0x24e   :  { %1628 = vrot.lane.b32.xlu0 %v2296_v25, %s2183_s0 }
 0x2b1   :  { %v1238_v10 = vpop.xlane.xlu0 %1237 }
 0x2b2   :  { %v1260_v11 = vsub.f32 %v1228_v42, %v1238_v10 }
 0x2b4   :  { %v1268_v12 = vmul.f32 1.442695, %v1260_v11 }
 0x2b5   :  { %v1241_v13 = vpop.xlane.xlu1 %1240  ;;  %v1244_v14 = vpop.xlane.xlu0 %1243 }
 0x2b6   :  { %2148 = vpow2.f32 %v1268_v12  ;;  %v1261_v15 = vsub.f32 %v1229_v47, %v1241_v13  ;;  %v1262_v16 = vsub.f32 %v1230_v48, %v1244_v14 }
 0x2b8   :  { %v1270_v17 = vmul.f32 1.442695, %v1261_v15  ;;  %v1272_v18 = vmul.f32 1.442695, %v1262_v16 }
 0x2b9   :  { %v1247_v20 = vpop.xlane.xlu0 %1246  ;;  %v1250_v21 = vpop.xlane.xlu1 %1249 }
 0x2ba   :  { %2150 = vpow2.f32 %v1270_v17  ;;  %v1263_v19 = vsub.f32 %v1231_v55, %v1247_v20  ;;  %v1264_v22 = vsub.f32 %v1232_v56, %v1250_v21 }
 0x2bb   :  { %2152 = vpow2.f32 %v1272_v18 }
 0x2bc   :  { %v1274_v23 = vmul.f32 1.442695, %v1263_v19  ;;  %v1276_v24 = vmul.f32 1.442695, %v1264_v22 }
 0x2bd   :  { %v1253_v26 = vpop.xlane.xlu0 %1252  ;;  %v1256_v25 = vpop.xlane.xlu1 %1255 }
 0x2be   :  { %2154 = vpow2.f32 %v1274_v23  ;;  %v1265_v27 = vsub.f32 %v1233_v63, %v1253_v26  ;;  %v1266_v28 = vsub.f32 %v1234_v1, %v1256_v25 }
 0x2bf   :  { %2156 = vpow2.f32 %v1276_v24 }
 0x2c0   :  { %v2149_v30 = vpop.eup %2148  ;;  %v1278_v32 = vmul.f32 1.442695, %v1265_v27  ;;  %v1280_v33 = vmul.f32 1.442695, %v1266_v28 }
 0x2c1   :  { %v1259_v34 = vpop.xlane.xlu0 %1258  ;;  %v1325_v35 = vpop.permute.xlu1 %1324  ;;  %v1284_v36 = vsel %vm27_vm0, %v2149_v30, 0.0 }
 0x2c2   :  { %2158 = vpow2.f32 %v1278_v32  ;;  %v1267_v37 = vsub.f32 %v1235_v7, %v1259_v34  ;;  %1285 = vadd.xlane.f32.xlu1 %v1284_v36  ;;  %2105 = vmatpush3.msra.mxu0 %v1325_v35 }
 0x2c3   :  { %2160 = vpow2.f32 %v1280_v33  ;;  %2114 = vmatprep.subr.mxu0 %v2180_v0 }
 0x2c4   :  { %v2151_v38 = vpop.eup %2150  ;;  %v1282_v39 = vmul.f32 1.442695, %v1267_v37 }
 0x2c5   :  { %v2153_v40 = vpop.eup %2152  ;;  %v1401_v41 = vpop.permute.xlu0 %1400  ;;  %v1287_v42 = vsel %vm27_vm0, %v2151_v38, 0.0 }
 0x2c6   :  { %2162 = vpow2.f32 %v1282_v39  ;;  %1288 = vadd.xlane.f32.xlu0 %v1287_v42  ;;  %2110 = vmatpush3.msra.mxu1 %v1401_v41  ;;  %v1290_v43 = vsel %vm27_vm0, %v2153_v40, 0.0  ;;  %v1477_v54 = vpop.permute.xlu1 %1476 }
 0x2c7   :  { %1291 = vadd.xlane.f32.xlu1 %v1290_v43  ;;  %2119 = vmatprep.subr.mxu1 %v2180_v0 }
 0x2c8   :  { %v2155_v44 = vpop.eup %2154 }
 0x2c9   :  { %v2157_v45 = vpop.eup %2156  ;;  %v1293_v46 = vsel %vm27_vm0, %v2155_v44, 0.0  ;;  %v1629_v57 = vpop.permute.xlu0 %1628 }
 0x2ca   :  { %1294 = vadd.xlane.f32.xlu0 %v1293_v46  ;;  %v1296_v47 = vsel %vm27_vm0, %v2157_v45, 0.0  ;;  %v1553_v55 = vpop.permute.xlu1 %1552 }
 0x2cb   :  { %1297 = vadd.xlane.f32.xlu1 %v1296_v47 }
 0x2cc   :  { %v2159_v48 = vpop.eup %2158 }
 0x2cd   :  { %v2161_v49 = vpop.eup %2160  ;;  %v1299_v50 = vsel %vm27_vm0, %v2159_v48, 0.0 }
 0x2ce   :  { %1300 = vadd.xlane.f32.xlu0 %v1299_v50  ;;  %v1302_v51 = vsel %vm27_vm0, %v2161_v49, 0.0  ;;  %v1705_v56 = vpop.permute.xlu1 %1704 }
 0x2cf   :  { %1303 = vadd.xlane.f32.xlu1 %v1302_v51 }
 0x2d0   :  { %v2386_v52 = vpop.eup %2162 }
 0x2d1   :  { %v1305_v53 = vsel %vm27_vm0, %v2386_v52, 0.0 }
 0x2d2   :  { %1306 = vadd.xlane.f32.xlu0 %v1305_v53 }
 0x2e0   :  { %1856 = vrot.lane.b32.xlu1 %v2306_v31, %s2183_s0 }
 0x2e8   :  { %1780 = vrot.lane.b32.xlu0 %v2302_v29, %s2183_s0 }
 0x34f   :  { %v1286_v58 = vpop.xlane.xlu1 %1285 }
 0x350   :  { %2164 = vrcp.f32 %v1286_v58 }
 0x353   :  { %v1289_v59 = vpop.xlane.xlu0 %1288 }
 0x354   :  { %2166 = vrcp.f32 %v1289_v59  ;;  %v1292_v60 = vpop.xlane.xlu1 %1291 }
 0x355   :  { %2168 = vrcp.f32 %v1292_v60 }
 0x357   :  { %v1295_v61 = vpop.xlane.xlu0 %1294 }
 0x358   :  { %2170 = vrcp.f32 %v1295_v61  ;;  %v1298_v62 = vpop.xlane.xlu1 %1297 }
 0x359   :  { %2172 = vrcp.f32 %v1298_v62 }
 0x35a   :  { %v2165_v63 = vpop.eup %2164 }
 0x35b   :  { %v1309_v1 = vmul.f32 %v2165_v63, %v2149_v30  ;;  %v1301_v31 = vpop.xlane.xlu0 %1300 }
 0x35c   :  { %2174 = vrcp.f32 %v1301_v31  ;;  %v1304_v2 = vpop.xlane.xlu1 %1303 }
 0x35d   :  { %2176 = vrcp.f32 %v1304_v2  ;;  %2107 = vmatmul.mubr.msk.f32.vlgmr.msra.gmra.mrb[16].mxu0 %vm27_vm0, %v1309_v1 }
 0x35e   :  { %v2167_v29 = vpop.eup %2166  ;;  %2115 = vmatpush3.msra.mxu0 %v1477_v54  ;;  %2116 = vmatprep.mubr.msk.f32.mxu0 %vm2181_vm1, %v2180_v0 }
 0x35f   :  { %v2169_v3 = vpop.eup %2168  ;;  %v1311_v4 = vmul.f32 %v2167_v29, %v2151_v38  ;;  %v1307_v5 = vpop.xlane.xlu0 %1306  ;;  %2124 = vmatprep.subr.mxu0 %v2180_v0 }
 0x360   :  { %v1313_v6 = vmul.f32 %v2169_v3, %v2153_v40  ;;  %2178 = vrcp.f32 %v1307_v5  ;;  %v1857_v16 = vpop.permute.xlu1 %1856 }
 0x361   :  { %2112 = vmatmul.mubr.msk.f32.vlgmr.msra.gmra.mrb[16].mxu1 %vm27_vm0, %v1311_v4 }
 0x362   :  { %v2171_v7 = vpop.eup %2170  ;;  %2117 = vmatmul.mubr.msk.f32.vlgmr.msra.gmra.mrb[18].mxu0 %vm27_vm0, %v1313_v6  ;;  %2120 = vmatpush3.msra.mxu1 %v1553_v55 }
 0x363   :  { %v2173_v8 = vpop.eup %2172  ;;  %v1315_v9 = vmul.f32 %v2171_v7, %v2155_v44  ;;  %2125 = vmatpush3.msra.mxu0 %v1629_v57  ;;  %2121 = vmatprep.mubr.msk.f32.mxu1 %vm2181_vm1, %v2180_v0  ;;  %v1781_v11 = vpop.permute.xlu0 %1780 }
 0x364   :  { %v1317_v10 = vmul.f32 %v2173_v8, %v2157_v45  ;;  %2126 = vmatprep.mubr.msk.f32.mxu0 %vm2181_vm1, %v2180_v0  ;;  %2129 = vmatprep.subr.mxu1 %v2180_v0 }
 0x365   :  { %2134 = vmatprep.subr.mxu0 %v2180_v0  ;;  %2122 = vmatmul.mubr.msk.f32.vlgmr.msra.gmra.mrb[18].mxu1 %vm27_vm0, %v1315_v9 }
 0x366   :  { %v2175_v12 = vpop.eup %2174  ;;  %2127 = vmatmul.mubr.msk.f32.vlgmr.msra.gmra.mrb[20].mxu0 %vm27_vm0, %v1317_v10  ;;  %2130 = vmatpush3.msra.mxu1 %v1705_v56 }
 0x367   :  { %v2177_v13 = vpop.eup %2176  ;;  %v1319_v14 = vmul.f32 %v2175_v12, %v2159_v48  ;;  %2135 = vmatpush3.msra.mxu0 %v1781_v11  ;;  %2131 = vmatprep.mubr.msk.f32.mxu1 %vm2181_vm1, %v2180_v0 }
 0x368   :  { %v1321_v15 = vmul.f32 %v2177_v13, %v2161_v49  ;;  %2136 = vmatprep.mubr.msk.f32.mxu0 %vm2181_vm1, %v2180_v0  ;;  %2139 = vmatprep.subr.mxu1 %v2180_v0 }
 0x369   :  { %2132 = vmatmul.mubr.msk.f32.vlgmr.msra.gmra.mrb[20].mxu1 %vm27_vm0, %v1319_v14 }
 0x36a   :  { %v2179_v17 = vpop.eup %2178  ;;  %2137 = vmatmul.mubr.msk.f32.vlgmr.msra.gmra.mrb[22].mxu0 %vm27_vm0, %v1321_v15  ;;  %2140 = vmatpush3.msra.mxu1 %v1857_v16 }
 0x36b   :  { %v1323_v18 = vmul.f32 %v2179_v17, %v2386_v52  ;;  %2141 = vmatprep.mubr.msk.f32.mxu1 %vm2181_vm1, %v2180_v0 }
 0x36d   :  { %2142 = vmatmul.mubr.msk.f32.vlgmr.msra.gmra.mrb[22].mxu1 %vm27_vm0, %v1323_v18 }
 0x430   :  { %v1396_v20 = vpop.f32.mrb[16].mxu0 }
 0x431   :  { %1932 = vst.msk [vmem:[%s2453_s2] sm:$0xff] %vm27_vm0, %v1396_v20  ;;  %v2108_v21 = vpop.f32.mrb[17].mxu0 }
 0x434   :  { %v1472_v19 = vpop.f32.mrb[16].mxu1 }
 0x435   :  { %1933 = vst.msk [vmem:[%s2453_s2 + $0x8] sm:$0xff] %vm27_vm0, %v1472_v19  ;;  %v1548_v22 = vpop.f32.mrb[18].mxu0  ;;  %v2113_v23 = vpop.f32.mrb[17].mxu1 }
 0x436   :  { %1934 = vst.msk [vmem:[%s2453_s2 + $0x10] sm:$0xff] %vm27_vm0, %v1548_v22  ;;  %v2118_v0 = vpop.f32.mrb[19].mxu0 }
 0x438   :  { %v1624_v24 = vpop.f32.mrb[18].mxu1 }
 0x439   :  { %1935 = vst.msk [vmem:[%s2453_s2 + $0x18] sm:$0xff] %vm27_vm0, %v1624_v24  ;;  %v1700_v26 = vpop.f32.mrb[20].mxu0  ;;  %v2123_v25 = vpop.f32.mrb[19].mxu1 }
 0x43a   :  { %1936 = vst.msk [vmem:[%s2453_s2 + $0x20] sm:$0xff] %vm27_vm0, %v1700_v26  ;;  %v2128_v27 = vpop.f32.mrb[21].mxu0 }
 0x43c   :  { %v1776_v28 = vpop.f32.mrb[20].mxu1 }
 0x43d   :  { %1937 = vst.msk [vmem:[%s2453_s2 + $0x28] sm:$0xff] %vm27_vm0, %v1776_v28  ;;  %v1852_v30 = vpop.f32.mrb[22].mxu0  ;;  %v2133_v32 = vpop.f32.mrb[21].mxu1 }
 0x43e   :  { %1938 = vst.msk [vmem:[%s2453_s2 + $0x30] sm:$0xff] %vm27_vm0, %v1852_v30  ;;  %v2138_v33 = vpop.f32.mrb[23].mxu0 }
 0x440   :  { %v1928_v34 = vpop.f32.mrb[22].mxu1 }
 0x441   :  { %1939 = vst.msk [vmem:[%s2453_s2 + $0x38] sm:$0xff] %vm27_vm0, %v1928_v34  ;;  %v2143_v35 = vpop.f32.mrb[23].mxu1 }

</bundles_post_ra>
